<compile_context>
chip_gen: v6e
topology: v6e:2x2x1
jax: 0.10.0
libtpu: 0.0.40
codegen_flags: <defaults>
</compile_context>

<pallas_src>
import functools
import math

import jax
import jax.numpy as jnp
from jax.experimental import pallas as pl
from jax.experimental.pallas import tpu as pltpu


def _chebyshev_cos_m(x, m):
    """cos(m * theta) expressed as T_m(cos(theta)); m is a compile-time int."""
    if m == 0:
        return jnp.ones_like(x)
    t_prev, t_cur = jnp.ones_like(x), x
    for _ in range(m - 1):
        t_prev, t_cur = t_cur, 2.0 * x * t_cur - t_prev
    return t_cur


def _round_up(x, n):
    return ((x + n - 1) // n) * n


def sphere_loss_kernel(yhat_ref, label_ref, out_ref, *,
                       m, scale, batch, block_rows, need_mask):
    # Load native-dtype tile, cast to f32 (v5e has no bf16 VPU/EUP).
    # TODO(synk): keep the (TB,C) element passes in bf16 on v6e/v7x and only
    # promote the (TB,1) psi/log math to f32.
    yhat = yhat_ref[...].astype(jnp.float32)             # (TB, C)
    labels = label_ref[...]                               # (TB, 1) int32
    tb, c = yhat.shape

    # One-hot as a bool mask only (no f32 mask temp).
    col = jax.lax.broadcasted_iota(jnp.int32, (tb, c), 1)
    one_hot = col == labels                                # (TB, C) bool

    # --- single streaming pass over the tile ---------------------------------
    # cos(theta_{y_i,i}) per row (masked lane reduction) and row max share the
    # same y_hat vregs; XLU reduce pushes co-issue with the VALU select.
    cos_t = jnp.sum(jnp.where(one_hot, yhat, 0.0), axis=1, keepdims=True)  # (TB,1)
    cmax = jnp.max(yhat, axis=1, keepdims=True)                            # (TB,1)
    cos_t = jnp.clip(cos_t, -1.0, 1.0)

    # exp argument as one fma per element; exp on the EUP slot.
    p = jnp.exp((yhat - cmax) * scale)                     # (TB, C), all <= 1
    sumexp = jnp.sum(p, axis=1, keepdims=True)             # (TB, 1)

    # --- lane-sparse (TB,1) psi math ------------------------------------------
    # k = floor(m*theta/pi) via monotone thresholds on cos(theta).
    k = jnp.zeros_like(cos_t)
    for j in range(1, m):
        thr = math.cos(j * math.pi / m)                    # python constant
        k = k + (cos_t <= thr).astype(jnp.float32)

    parity = k - 2.0 * jnp.floor(k * 0.5)                  # k mod 2
    co = 1.0 - 2.0 * parity                                # (-1)^k
    cos_mt = _chebyshev_cos_m(cos_t, m)                    # cos(m*theta)
    psi = co * cos_mt - 2.0 * k                            # (TB, 1)

    # --- corrected log-sum-exp (no (TB,C) fc tile) ----------------------------
    # Invariant: psi <= cos_theta <= cmax, so scale*cmax remains a valid upper
    # bound after swapping the target logit; exp(s*(psi-cmax)) may underflow
    # to 0 exactly as the materialized-fc version would.
    sumexp_fc = (sumexp
                 - jnp.exp((cos_t - cmax) * scale)
                 + jnp.exp((psi - cmax) * scale))
    sumexp_fc = jnp.maximum(sumexp_fc, 1e-38)              # guard vs. log(<=0)
    lse = jnp.log(sumexp_fc) + cmax * scale                # (TB, 1)
    per_row = lse - psi * scale                            # (TB, 1)

    if need_mask:
        # Ragged edge block: rows >= batch hold garbage (OOB reads); the
        # where-select discards any inf/NaN produced from them.
        row = (jax.lax.broadcasted_iota(jnp.int32, (tb, 1), 0)
               + pl.program_id(0) * block_rows)
        per_row = jnp.where(row < batch, per_row, 0.0)

    partial = jnp.sum(per_row, axis=0, keepdims=True)      # (1, 1)
    # Lane-dense store; pre-divide by the block size so the wrapper epilogue
    # is a plain dense sum (no strided gather).
    out_ref[...] = jnp.broadcast_to(partial * (1.0 / (8 * 128)), out_ref.shape)


def sphere_loss_pallas(y_hat, y, *, m=4, scale=30.0, block_rows=None):
    """y_hat: (B, num_class) cosine logits; y: (B,) int labels -> scalar loss."""
    B, C = y_hat.shape
    labels = y.reshape(B, 1).astype(jnp.int32)

    itemsize = jnp.dtype(y_hat.dtype).itemsize
    row_align = 16 if itemsize < 4 else 8                  # bf16 vs f32 sublane packing

    # Chip-aware VMEM budget: ~48 MiB on v7x (64 MiB physical), ~96 MiB on
    # v5e / v6e (128 MiB physical).
    try:
        vmem_cap = int(pltpu.get_tpu_info().vmem_capacity_bytes)
    except Exception:
        vmem_cap = 64 * 1024 * 1024                         # conservative (v7x)
    vmem_limit = min((vmem_cap * 3) // 4, 100 * 1024 * 1024)

    if block_rows is None:
        # Per-step footprint: double-buffered native input + ~4 live f32
        # (TB, C) temporaries (fc tile no longer materialized).
        budget = (vmem_limit * 2) // 3
        bytes_per_row = C * (2 * itemsize + 4 * 4)
        tb = max(row_align, min(2048, budget // max(bytes_per_row, 1)))
        tb = _round_up(tb, row_align)
        # Keep >= 2 tiles where possible so the v7x second TensorCore gets work.
        tb = min(tb, max(_round_up(pl.cdiv(B, 2), row_align), row_align))
    else:
        tb = _round_up(block_rows, row_align)
    tb = min(tb, _round_up(B, row_align))

    num_tiles = pl.cdiv(B, tb)
    need_mask = (B % tb) != 0                               # ragged edge block

    # TODO(synk): for very large num_class add a second ("arbitrary", innermost)
    # grid axis over C with an online logsumexp + scalar-prefetched labels.

    kernel = functools.partial(
        sphere_loss_kernel, m=int(m), scale=float(scale),
        batch=int(B), block_rows=int(tb), need_mask=need_mask)

    partials = pl.pallas_call(
        kernel,
        out_shape=jax.ShapeDtypeStruct((num_tiles * 8, 128), jnp.float32),
        grid=(num_tiles,),
        in_specs=[
            pl.BlockSpec((tb, C), lambda i: (i, 0)),
            pl.BlockSpec((tb, 1), lambda i: (i, 0)),
        ],
        out_specs=pl.BlockSpec((8, 128), lambda i: (i, 0)),
        compiler_params=pltpu.CompilerParams(
            dimension_semantics=("parallel",),
            vmem_limit_bytes=int(vmem_limit),
        ),
    )(y_hat, labels)

    # Each (8,128) block holds its tile's partial / 1024 replicated -> dense sum.
    return jnp.sum(partials) / B


def sphere_loss_reference(y_hat, y, *, m=4, scale=30.0):
    """Pure-JAX reference mirroring the PyTorch forward (uses arccos)."""
    B, C = y_hat.shape
    one_hot = jax.nn.one_hot(y, C, dtype=jnp.float32)
    cos_t = jnp.sum(y_hat.astype(jnp.float32) * one_hot, axis=1)
    theta = jnp.arccos(jnp.clip(cos_t, -1.0, 1.0))
    k = jnp.floor(theta * m / jnp.pi)
    co = jnp.power(-1.0, k)
    psi = co * jnp.cos(m * theta) - 2.0 * k
    fc = jnp.where(one_hot.astype(bool), psi[:, None], y_hat) * scale
    lse = jax.scipy.special.logsumexp(fc, axis=1)
    tgt = jnp.sum(fc * one_hot, axis=1)
    return jnp.mean(lse - tgt)


if __name__ == "__main__":
    # hyperparameters of sphere_loss(m, scale, num_class, use_gpu)
    M = 4
    SCALE = 30.0

    key = jax.random.PRNGKey(0)
    k1, k2, k3, k4 = jax.random.split(key, 4)

    # Case 1: single-tile path (B=8, num_class=128).
    B1, C1 = 8, 128
    y_hat1 = jax.random.uniform(k1, (B1, C1), jnp.float32, -0.95, 0.95)
    y1 = jax.random.randint(k2, (B1,), 0, C1, dtype=jnp.int32)
    loss1 = jax.block_until_ready(sphere_loss_pallas(y_hat1, y1, m=M, scale=SCALE))
    ref1 = jax.block_until_ready(sphere_loss_reference(y_hat1, y1, m=M, scale=SCALE))
    assert jnp.isfinite(loss1), "non-finite loss (case 1)"
    assert abs(float(loss1) - float(ref1)) < 1e-3 * (1.0 + abs(float(ref1))), (
        f"case 1 mismatch: pallas={float(loss1)} ref={float(ref1)}")

    # Case 2: multi-tile + ragged last tile (B not a multiple of block_rows),
    # exercising the no-pad / in-kernel masking path.
    B2, C2 = 12, 256
    y_hat2 = jax.random.uniform(k3, (B2, C2), jnp.float32, -0.95, 0.95)
    y2 = jax.random.randint(k4, (B2,), 0, C2, dtype=jnp.int32)
    loss2 = jax.block_until_ready(
        sphere_loss_pallas(y_hat2, y2, m=M, scale=SCALE, block_rows=8))
    ref2 = jax.block_until_ready(sphere_loss_reference(y_hat2, y2, m=M, scale=SCALE))
    assert jnp.isfinite(loss2), "non-finite loss (case 2)"
    assert abs(float(loss2) - float(ref2)) < 1e-3 * (1.0 + abs(float(ref2))), (
        f"case 2 mismatch: pallas={float(loss2)} ref={float(ref2)}")

    print("KERNEL_OK")
</pallas_src>

<mosaic_0001>
module attributes {stable_mosaic.version = 11 : i64} {
  func.func @sphere_loss_kernel(%arg0: i32, %arg1: memref<8x128xf32, #tpu.memory_space<vmem>>, %arg2: memref<8x1xi32, #tpu.memory_space<vmem>>, %arg3: memref<8x128xf32, #tpu.memory_space<vmem>>) attributes {dimension_semantics = [#tpu.dimension_semantics<parallel>], iteration_bounds = array<i64: 1>, scalar_prefetch = 0 : i64, scratch_operands = 0 : i64, tpu.core_type = #tpu.core_type<tc>, window_params = [{transform_indices = @transform_0, window_bounds = array<i64: 8, 128>}, {transform_indices = @transform_1, window_bounds = array<i64: 8, 1>}, {transform_indices = @transform_2, window_bounds = array<i64: 8, 128>}]} {
    %c0 = arith.constant 0 : index
    %c0_0 = arith.constant 0 : index
    %0 = vector.load %arg1[%c0, %c0_0] : memref<8x128xf32, #tpu.memory_space<vmem>>, vector<8x128xf32>
    %c0_1 = arith.constant 0 : index
    %c0_2 = arith.constant 0 : index
    %1 = vector.load %arg2[%c0_1, %c0_2] : memref<8x1xi32, #tpu.memory_space<vmem>>, vector<8x1xi32>
    %2 = tpu.iota {dimensions = array<i32: 1>} : vector<8x128xi32>
    %3 = vector.broadcast %1 : vector<8x1xi32> to vector<8x128xi32>
    %4 = arith.cmpi eq, %2, %3 : vector<8x128xi32>
    %cst = arith.constant 0.000000e+00 : f32
    %5 = vector.broadcast %cst : f32 to vector<8x128xf32>
    %6 = arith.select %4, %0, %5 : vector<8x128xi1>, vector<8x128xf32>
    %cst_3 = arith.constant dense<0.000000e+00> : vector<8xf32>
    %7 = vector.multi_reduction <add>, %6, %cst_3 [1] : vector<8x128xf32> to vector<8xf32>
    %8 = vector.shape_cast %7 : vector<8xf32> to vector<8x1xf32>
    %cst_4 = arith.constant dense<0xFF800000> : vector<8xf32>
    %9 = vector.multi_reduction <maximumf>, %0, %cst_4 [1] : vector<8x128xf32> to vector<8xf32>
    %10 = vector.shape_cast %9 : vector<8xf32> to vector<8x1xf32>
    %cst_5 = arith.constant -1.000000e+00 : f32
    %cst_6 = arith.constant 1.000000e+00 : f32
    %11 = vector.broadcast %cst_5 : f32 to vector<8x1xf32>
    %12 = arith.maximumf %11, %8 : vector<8x1xf32>
    %13 = vector.broadcast %cst_6 : f32 to vector<8x1xf32>
    %14 = arith.minimumf %13, %12 : vector<8x1xf32>
    %15 = vector.broadcast %10 : vector<8x1xf32> to vector<8x128xf32>
    %16 = arith.subf %0, %15 : vector<8x128xf32>
    %cst_7 = arith.constant 3.000000e+01 : f32
    %17 = vector.broadcast %cst_7 : f32 to vector<8x128xf32>
    %18 = arith.mulf %16, %17 : vector<8x128xf32>
    %19 = math.exp %18 : vector<8x128xf32>
    %cst_8 = arith.constant dense<0.000000e+00> : vector<8xf32>
    %20 = vector.multi_reduction <add>, %19, %cst_8 [1] : vector<8x128xf32> to vector<8xf32>
    %21 = vector.shape_cast %20 : vector<8xf32> to vector<8x1xf32>
    %cst_9 = arith.constant 0.000000e+00 : f32
    %22 = vector.broadcast %cst_9 : f32 to vector<8x1xf32>
    %cst_10 = arith.constant 0.707106769 : f32
    %23 = vector.broadcast %cst_10 : f32 to vector<8x1xf32>
    %24 = arith.cmpf ole, %14, %23 : vector<8x1xf32>
    %25 = arith.extui %24 : vector<8x1xi1> to vector<8x1xi32>
    %26 = arith.sitofp %25 : vector<8x1xi32> to vector<8x1xf32>
    %27 = arith.addf %22, %26 : vector<8x1xf32>
    %cst_11 = arith.constant 6.12323426E-17 : f32
    %28 = vector.broadcast %cst_11 : f32 to vector<8x1xf32>
    %29 = arith.cmpf ole, %14, %28 : vector<8x1xf32>
    %30 = arith.extui %29 : vector<8x1xi1> to vector<8x1xi32>
    %31 = arith.sitofp %30 : vector<8x1xi32> to vector<8x1xf32>
    %32 = arith.addf %27, %31 : vector<8x1xf32>
    %cst_12 = arith.constant -0.707106769 : f32
    %33 = vector.broadcast %cst_12 : f32 to vector<8x1xf32>
    %34 = arith.cmpf ole, %14, %33 : vector<8x1xf32>
    %35 = arith.extui %34 : vector<8x1xi1> to vector<8x1xi32>
    %36 = arith.sitofp %35 : vector<8x1xi32> to vector<8x1xf32>
    %37 = arith.addf %32, %36 : vector<8x1xf32>
    %cst_13 = arith.constant 5.000000e-01 : f32
    %38 = vector.broadcast %cst_13 : f32 to vector<8x1xf32>
    %39 = arith.mulf %37, %38 : vector<8x1xf32>
    %40 = math.floor %39 : vector<8x1xf32>
    %cst_14 = arith.constant 2.000000e+00 : f32
    %41 = vector.broadcast %cst_14 : f32 to vector<8x1xf32>
    %42 = arith.mulf %41, %40 : vector<8x1xf32>
    %43 = arith.subf %37, %42 : vector<8x1xf32>
    %cst_15 = arith.constant 2.000000e+00 : f32
    %44 = vector.broadcast %cst_15 : f32 to vector<8x1xf32>
    %45 = arith.mulf %44, %43 : vector<8x1xf32>
    %cst_16 = arith.constant 1.000000e+00 : f32
    %46 = vector.broadcast %cst_16 : f32 to vector<8x1xf32>
    %47 = arith.subf %46, %45 : vector<8x1xf32>
    %cst_17 = arith.constant 1.000000e+00 : f32
    %48 = vector.broadcast %cst_17 : f32 to vector<8x1xf32>
    %cst_18 = arith.constant 2.000000e+00 : f32
    %49 = vector.broadcast %cst_18 : f32 to vector<8x1xf32>
    %50 = arith.mulf %49, %14 : vector<8x1xf32>
    %51 = arith.mulf %50, %14 : vector<8x1xf32>
    %52 = arith.subf %51, %48 : vector<8x1xf32>
    %cst_19 = arith.constant 2.000000e+00 : f32
    %53 = vector.broadcast %cst_19 : f32 to vector<8x1xf32>
    %54 = arith.mulf %53, %14 : vector<8x1xf32>
    %55 = arith.mulf %54, %52 : vector<8x1xf32>
    %56 = arith.subf %55, %14 : vector<8x1xf32>
    %cst_20 = arith.constant 2.000000e+00 : f32
    %57 = vector.broadcast %cst_20 : f32 to vector<8x1xf32>
    %58 = arith.mulf %57, %14 : vector<8x1xf32>
    %59 = arith.mulf %58, %56 : vector<8x1xf32>
    %60 = arith.subf %59, %52 : vector<8x1xf32>
    %61 = arith.mulf %47, %60 : vector<8x1xf32>
    %cst_21 = arith.constant 2.000000e+00 : f32
    %62 = vector.broadcast %cst_21 : f32 to vector<8x1xf32>
    %63 = arith.mulf %62, %37 : vector<8x1xf32>
    %64 = arith.subf %61, %63 : vector<8x1xf32>
    %65 = arith.subf %14, %10 : vector<8x1xf32>
    %cst_22 = arith.constant 3.000000e+01 : f32
    %66 = vector.broadcast %cst_22 : f32 to vector<8x1xf32>
    %67 = arith.mulf %65, %66 : vector<8x1xf32>
    %68 = math.exp %67 : vector<8x1xf32>
    %69 = arith.subf %21, %68 : vector<8x1xf32>
    %70 = arith.subf %64, %10 : vector<8x1xf32>
    %cst_23 = arith.constant 3.000000e+01 : f32
    %71 = vector.broadcast %cst_23 : f32 to vector<8x1xf32>
    %72 = arith.mulf %70, %71 : vector<8x1xf32>
    %73 = math.exp %72 : vector<8x1xf32>
    %74 = arith.addf %69, %73 : vector<8x1xf32>
    %cst_24 = arith.constant 9.99999935E-39 : f32
    %75 = vector.broadcast %cst_24 : f32 to vector<8x1xf32>
    %76 = arith.maximumf %74, %75 : vector<8x1xf32>
    %77 = math.log %76 : vector<8x1xf32>
    %cst_25 = arith.constant 3.000000e+01 : f32
    %78 = vector.broadcast %cst_25 : f32 to vector<8x1xf32>
    %79 = arith.mulf %10, %78 : vector<8x1xf32>
    %80 = arith.addf %77, %79 : vector<8x1xf32>
    %cst_26 = arith.constant 3.000000e+01 : f32
    %81 = vector.broadcast %cst_26 : f32 to vector<8x1xf32>
    %82 = arith.mulf %64, %81 : vector<8x1xf32>
    %83 = arith.subf %80, %82 : vector<8x1xf32>
    %cst_27 = arith.constant dense<0.000000e+00> : vector<1xf32>
    %84 = vector.multi_reduction <add>, %83, %cst_27 [0] : vector<8x1xf32> to vector<1xf32>
    %85 = vector.shape_cast %84 : vector<1xf32> to vector<1x1xf32>
    %cst_28 = arith.constant 9.765625E-4 : f32
    %86 = vector.broadcast %cst_28 : f32 to vector<1x1xf32>
    %87 = arith.mulf %85, %86 : vector<1x1xf32>
    %88 = vector.shape_cast %87 : vector<1x1xf32> to vector<1x1xf32>
    %89 = vector.broadcast %88 : vector<1x1xf32> to vector<8x128xf32>
    %c0_29 = arith.constant 0 : index
    %c0_30 = arith.constant 0 : index
    %90 = vector.load %arg3[%c0_29, %c0_30] : memref<8x128xf32, #tpu.memory_space<vmem>>, vector<8x128xf32>
    tpu.vector_store %arg3[%c0_29, %c0_30], %89 {strides = array<i32>} : memref<8x128xf32, #tpu.memory_space<vmem>>, vector<8x128xf32>,
    return
  }
  func.func @transform_0(%arg0: i32) -> (i32, i32) {
    %c0_i32 = arith.constant 0 : i32
    %c0_i32_0 = arith.constant 0 : i32
    return %arg0, %c0_i32 : i32, i32
  }
  func.func @transform_1(%arg0: i32) -> (i32, i32) {
    %c0_i32 = arith.constant 0 : i32
    %c0_i32_0 = arith.constant 0 : i32
    return %arg0, %c0_i32 : i32, i32
  }
  func.func @transform_2(%arg0: i32) -> (i32, i32) {
    %c0_i32 = arith.constant 0 : i32
    %c0_i32_0 = arith.constant 0 : i32
    return %arg0, %c0_i32 : i32, i32
  }
}

</mosaic_0001>

<bundles_post_ra>
// kernel: tpu_custom_call.1
= control target key start
LH: loop header
LB: loop body
LE: loop exit
PB: predicated region body
PF: predicated region fallthrough
CT: control target
= control target key end

     0   :  { %s166_s0 = inlined_call_operand.vmem [shape: f32[8,128], index: 0, kind: input, shape index: {}]   ;;  %s167_s1 = inlined_call_operand.vmem [shape: s32[8,1], index: 1, kind: input, shape index: {}]   ;;  %s168_s2 = inlined_call_operand.hbm [shape: f32[8,128], index: 2, kind: output, shape index: {}]  }
   0x1   :  { %v13_v0 = vld [vmem:[%s167_s1] sm:$0xff] }
   0x2   :  { %7 = vsyncpa [#allocation3], 0  ;;  %v139_v1 = vmov 0   ;;  %v12_v2 = vld [vmem:[%s166_s0] sm:$0xff]  ;;  %v14_v3 = vlaneseq  ;;  %v140_v14 = vmov 0.0   ;;  %s141_s0 = smov [#allocation2]  }
   0x3   :  { %108 = vset.pattern.permute.xlu0 %v139_v1  ;;  %s92_s1 = sshll.u32 %s141_s0, 4  ;;  %s93_s1 = int_to_ptr.vmem [resolvable:$true] %s92_s1 }
   0x4   :  { %17 = vperm.xlu0 %108, %v13_v0   ;;  %v15_v4 = vand.u32 127, %v14_v3  ;;  %s117_s13 = scalar_lea.vmem %s93_s1, 128  ;;  %p122_p1 = scmp.lt.s32.totalorder %s93_s1, %s93_s1 }
   0x5   :  { %p118_p0 = scmp.ne.s32.totalorder %s93_s1, %s117_s13  ;;  %p123_p2 = scmp.lt.s32.totalorder %s117_s13, %s117_s13 }
   0x7   :  { %p124_p3 = por %p123_p2, %p122_p1 }
   0x9   :  { %p125_p4 = pnand %p124_p3, %p118_p0 }
  0x23   :  { %23 = vmax.xlane.f32.xlu0 %v12_v2 }
  0x7f   :  { %v18_v5 = vpop.permute.xlu0 %17 }
  0x80   :  { %vm19_vm0 = vcmp.eq.s32.totalorder %v15_v4, %v18_v5 }
  0x81   :  { %v20_v6 = vsel %vm19_vm0, %v12_v2, 0.0 }
  0x82   :  { %21 = vadd.xlane.f32.xlu1 %v20_v6 }
  0xac   :  { %v24_v7 = vpop.xlane.xlu0 %23 }
  0xad   :  { %v27_v8 = vsub.f32 %v12_v2, %v24_v7  ;;  %v74_v49 = vmul.f32 30.0, %v24_v7 }
  0xaf   :  { %v28_v9 = vmul.f32 30.0, %v27_v8 }
  0xb1   :  { %v29_v10 = vmul.f32 1.442695, %v28_v9 }
  0xb3   :  { %109 = vpow2.f32 %v29_v10 }
  0xc0   :  { %v110_v11 = vpop.eup %109 }
  0xc1   :  { %31 = vadd.xlane.f32.xlu1 %v110_v11 }
 0x10b   :  { %v22_v12 = vpop.xlane.xlu1 %21 }
 0x10c   :  { %v100_v13 = vclamps-f32 %v22_v12, 1.0 }
 0x10e   :  { %vm33_vm1 = vcmp.le.f32.partialorder %v100_v13, 0.70710677  ;;  %vm37_vm2 = vcmp.le.f32.partialorder %v100_v13, 6.123234e-17  ;;  %vm41_vm3 = vcmp.le.f32.partialorder %v100_v13, -0.70710677  ;;  %v61_v36 = vsub.f32 %v100_v13, %v24_v7 }
 0x10f   :  { %v101_v15 = vsel %vm33_vm1, 1.0, %v140_v14  ;;  %v102_v16 = vsel %vm37_vm2, 1.0, %v140_v14  ;;  %v103_v18 = vsel %vm41_vm3, 1.0, %v140_v14  ;;  %v51_v19 = vmul.f32 2.0, %v100_v13 }
 0x110   :  { %v40_v17 = vadd.f32 %v102_v16, %v101_v15  ;;  %v62_v38 = vmul.f32 30.0, %v61_v36 }
 0x111   :  { %v52_v22 = vmul.f32 %v100_v13, %v51_v19 }
 0x112   :  { %v44_v20 = vadd.f32 %v103_v18, %v40_v17  ;;  %v63_v40 = vmul.f32 1.442695, %v62_v38 }
 0x113   :  { %v104_v24 = vadd.f32 -1.0, %v52_v22 }
 0x114   :  { %v45_v21 = vmul.f32 0.5, %v44_v20  ;;  %v59_v34 = vmul.f32 2.0, %v44_v20  ;;  %111 = vpow2.f32 %v63_v40 }
 0x115   :  { %v54_v26 = vmul.f32 %v104_v24, %v51_v19 }
 0x116   :  { %v46_v23 = vfloor.f32 %v45_v21 }
 0x117   :  { %v55_v28 = vsub.f32 %v54_v26, %v100_v13 }
 0x118   :  { %v47_v25 = vmul.f32 2.0, %v46_v23 }
 0x119   :  { %v56_v30 = vmul.f32 %v55_v28, %v51_v19 }
 0x11a   :  { %v48_v27 = vsub.f32 %v44_v20, %v47_v25 }
 0x11b   :  { %v57_v32 = vsub.f32 %v56_v30, %v104_v24 }
 0x11c   :  { %v49_v29 = vmul.f32 2.0, %v48_v27 }
 0x11e   :  { %v50_v31 = vsub.f32 1.0, %v49_v29 }
 0x120   :  { %v58_v33 = vmul.f32 %v57_v32, %v50_v31 }
 0x121   :  { %v112_v42 = vpop.eup %111 }
 0x122   :  { %v60_v35 = vsub.f32 %v58_v33, %v59_v34 }
 0x124   :  { %v66_v37 = vsub.f32 %v60_v35, %v24_v7  ;;  %v76_v52 = vmul.f32 30.0, %v60_v35 }
 0x126   :  { %v67_v39 = vmul.f32 30.0, %v66_v37 }
 0x128   :  { %v68_v41 = vmul.f32 1.442695, %v67_v39 }
 0x12a   :  { %113 = vpow2.f32 %v68_v41 }
 0x137   :  { %v114_v45 = vpop.eup %113 }
 0x14a   :  { %v32_v43 = vpop.xlane.xlu1 %31 }
 0x14b   :  { %v65_v44 = vsub.f32 %v32_v43, %v112_v42 }
 0x14d   :  { %v70_v46 = vadd.f32 %v114_v45, %v65_v44 }
 0x14f   :  { %v71_v47 = vmax.f32 %v70_v46, 1e-38 }
 0x151   :  { %115 = vlog2.f32 %v71_v47 }
 0x15e   :  { %v116_v48 = vpop.eup %115 }
 0x15f   :  { %v73_v50 = vmul.f32 0.6931472, %v116_v48 }
 0x161   :  { %v75_v51 = vadd.f32 %v74_v49, %v73_v50 }
 0x163   :  { %v77_v53 = vsub.f32 %v75_v51, %v76_v52 }
 0x165   :  { %v78_v54 = vrot.slane %v77_v53, 4 }
 0x167   :  { %v79_v55 = vadd.f32 %v78_v54, %v77_v53 }
 0x169   :  { %v80_v56 = vrot.slane %v79_v55, 2 }
 0x16b   :  { %v81_v57 = vadd.f32 %v80_v56, %v79_v55 }
 0x16d   :  { %v82_v58 = vrot.slane %v81_v57, 1 }
 0x16f   :  { %v83_v59 = vadd.f32 %v82_v58, %v81_v57 }
 0x171   :  { %v84_v60 = vmul.f32 0.0009765625, %v83_v59 }
 0x173   :  { %85 = vst [vmem:[#allocation2] sm:$0xff] %v84_v60 }
 0x174   :  { %128 = shalt.err (!%p125_p4)
}
 0x175   :  { %95 = dma.vmem_to_hbm [thread:$0]  %s93_s1, 128, %s168_s2, [#allocation3]  }
 0x176   :  { %137 = dma.done.wait [#allocation3], 128  }
 0x177   :  { %138 = vsyncadd [#allocation3], 4294967168 }
 0x178   :  { %99 = vsyncpa [#allocation3], 1 }

</bundles_post_ra>
